<compile_context>
chip_gen: v6e
topology: v6e:2x2x1
jax: 0.10.0
libtpu: 0.0.40
codegen_flags: <defaults>
</compile_context>

<pallas_src>
import functools

import jax
import jax.numpy as jnp
from jax.experimental import pallas as pl
from jax.experimental.pallas import tpu as pltpu


def _round_up(x, m):
    return ((x + m - 1) // m) * m


def _pick_tile(dim, target, align):
    """Largest multiple of `align` that divides `dim` and is <= target, else dim."""
    if dim <= target:
        return dim
    t = (min(target, dim) // align) * align
    while t >= align:
        if dim % t == 0:
            return t
        t -= align
    return dim


def _tpu_vmem_bytes():
    """Physical VMEM per TensorCore; defensive fallback = 64 MiB (v7x-sized)."""
    try:
        info = pltpu.get_tpu_info()
        for attr in ("vmem_capacity_bytes", "vmem_bytes", "vmem_size_bytes",
                     "vmem_size", "vmem_capacity"):
            v = getattr(info, attr, None)
            if v:
                return int(v)
    except Exception:
        pass
    return 64 * 1024 * 1024


def _ffn_kernel_acc(x_ref, w1_ref, b1_ref, w2_ref, b2_ref, o_ref, acc_ref):
    """Scratch-accumulator variant (used when the output dtype is not f32)."""
    k = pl.program_id(1)

    @pl.when(k == 0)
    def _():
        acc_ref[...] = jnp.zeros_like(acc_ref)

    # First matmul slice on the MXU (f32 accumulation); bias + ReLU in f32 (VPU).
    h = jnp.dot(x_ref[...], w1_ref[...], preferred_element_type=jnp.float32)
    h = jnp.maximum(h + b1_ref[...].astype(jnp.float32), 0.0)

    # Second matmul slice: cast h back to the weight dtype, accumulate in f32.
    acc_ref[...] += jnp.dot(h.astype(w2_ref.dtype), w2_ref[...],
                            preferred_element_type=jnp.float32)

    @pl.when(k == pl.num_programs(1) - 1)
    def _():
        y = acc_ref[...] + b2_ref[...].astype(jnp.float32)
        o_ref[...] = y.astype(o_ref.dtype)


def _ffn_kernel_f32out(x_ref, w1_ref, b1_ref, w2_ref, b2_ref, o_ref):
    """f32-output variant: accumulate directly into the resident output block."""
    k = pl.program_id(1)

    @pl.when(k == 0)
    def _():
        # Fold b2 once at init; subsequent k-steps just accumulate partials.
        o_ref[...] = jnp.broadcast_to(b2_ref[...].astype(jnp.float32), o_ref.shape)

    h = jnp.dot(x_ref[...], w1_ref[...], preferred_element_type=jnp.float32)
    h = jnp.maximum(h + b1_ref[...].astype(jnp.float32), 0.0)
    o_ref[...] += jnp.dot(h.astype(w2_ref.dtype), w2_ref[...],
                          preferred_element_type=jnp.float32)


@functools.partial(jax.jit, static_argnames=("tm", "tk"))
def feed_forward(x, w1, b1, w2, b2, *, tm=None, tk=None):
    """x: (batch, seq, d_model). Weights in (in, out) layout, biases (1, out)."""
    batch, seq, d_model = x.shape
    d_ff = w1.shape[1]
    n = batch * seq
    x2 = x.reshape(n, d_model)

    in_bytes = x.dtype.itemsize
    out_bytes = in_bytes
    f32_out = x.dtype == jnp.float32

    # ---- Per-generation tuning (trace-time hardware query). ----
    vmem_phys = _tpu_vmem_bytes()
    small_vmem = vmem_phys <= 64 * 1024 * 1024          # v7x-like: 64 MiB / 2 TCs
    if tm is None:
        tm = 512 if small_vmem else 1024                 # crosses the HBM roofline
    if tk is None:
        tk = 512 if small_vmem else 1024
    if small_vmem:
        vmem_cap = 52 * 1024 * 1024                      # leave compiler headroom
    else:
        vmem_cap = min(100 * 1024 * 1024, vmem_phys - 24 * 1024 * 1024)

    # ---- Row tiling: pick the number of row tiles first, then a tight tile,
    # so padding is at most 8*r junk rows. On 2-TC chips keep >= 2 row tiles. ----
    r = max(1, -(-n // tm))                              # ceil(n / tm)
    if small_vmem and r == 1 and n >= 16:
        r = 2                                            # feed both TensorCores
    tm_eff = _round_up(-(-n // r), 8)
    n_pad = r * tm_eff

    # K tile over d_ff: a 128-multiple that divides d_ff (falls back to d_ff).
    tk_eff = _pick_tile(d_ff, tk, 128)

    # ---- VMEM fitting: shrink tk, then tm, until the footprint fits. ----
    def _vmem_need(tm_, tk_):
        need = 2 * (tm_ * d_model * in_bytes                 # x tile (double-buf)
                    + d_model * tk_ * w1.dtype.itemsize      # W1 slab
                    + tk_ * d_model * w2.dtype.itemsize      # W2 slab
                    + tk_ * b1.dtype.itemsize                # b1 slab
                    + d_model * b2.dtype.itemsize            # b2 (resident)
                    + tm_ * d_model * out_bytes)             # out tile
        if not f32_out:
            need += tm_ * d_model * 4                        # f32 scratch acc
        return need

    for _ in range(16):
        if _vmem_need(tm_eff, tk_eff) <= vmem_cap:
            break
        new_tk = _pick_tile(d_ff, max(128, tk_eff // 2), 128)
        if new_tk < tk_eff:
            tk_eff = new_tk
        elif tm_eff > 256:
            r += 1
            tm_eff = _round_up(-(-n // r), 8)
            n_pad = r * tm_eff
        else:
            break

    if n_pad != n:
        x2 = jnp.pad(x2, ((0, n_pad - n), (0, 0)))

    grid = (n_pad // tm_eff, d_ff // tk_eff)
    grid0 = grid[0]

    # Honest advisory cost: weights re-streamed once per row tile.
    bytes_accessed = (
        n_pad * d_model * in_bytes                       # x read once
        + n_pad * d_model * out_bytes                    # out written once
        + grid0 * (w1.size * w1.dtype.itemsize
                   + w2.size * w2.dtype.itemsize
                   + b1.size * b1.dtype.itemsize
                   + b2.size * b2.dtype.itemsize))
    cost = pl.CostEstimate(flops=4 * n_pad * d_model * d_ff,
                           transcendentals=0,
                           bytes_accessed=bytes_accessed)

    vmem_limit = int(min(vmem_cap,
                         max(32 * 1024 * 1024, _vmem_need(tm_eff, tk_eff) * 5 // 4)))

    in_specs = [
        pl.BlockSpec((tm_eff, d_model), lambda i, k: (i, 0)),   # x rows (resident over k)
        pl.BlockSpec((d_model, tk_eff), lambda i, k: (0, k)),   # W1 k-slab
        pl.BlockSpec((1, tk_eff), lambda i, k: (0, k)),         # b1 k-slab
        pl.BlockSpec((tk_eff, d_model), lambda i, k: (k, 0)),   # W2 k-slab
        pl.BlockSpec((1, d_model), lambda i, k: (0, 0)),        # b2 resident
    ]
    out_spec = pl.BlockSpec((tm_eff, d_model), lambda i, k: (i, 0))

    if f32_out:
        kernel = _ffn_kernel_f32out
        scratch = []                                     # accumulate into o_ref
    else:
        kernel = _ffn_kernel_acc
        scratch = [pltpu.VMEM((tm_eff, d_model), jnp.float32)]

    # TODO(synk): optional v7x-only third parallel axis over d_model output
    # columns (disjoint W2 weight streaming per core) for tiny-N decode shapes.
    out = pl.pallas_call(
        kernel,
        out_shape=jax.ShapeDtypeStruct((n_pad, d_model), x.dtype),
        grid_spec=pltpu.PrefetchScalarGridSpec(
            num_scalar_prefetch=0,
            grid=grid,
            in_specs=in_specs,
            out_specs=out_spec,
            scratch_shapes=scratch),
        compiler_params=pltpu.CompilerParams(
            dimension_semantics=("parallel", "arbitrary"),
            vmem_limit_bytes=vmem_limit),
        cost_estimate=cost,
    )(x2, w1, b1, w2, b2)

    return out[:n].reshape(batch, seq, d_model)


def init_params(key, d_model, dtype=jnp.float32):
    """Deterministic init matching nn.Linear shapes (stored transposed)."""
    d_ff = 4 * d_model
    k1, k2, k3, k4 = jax.random.split(key, 4)
    lim1 = 1.0 / jnp.sqrt(d_model)
    lim2 = 1.0 / jnp.sqrt(d_ff)
    w1 = jax.random.uniform(k1, (d_model, d_ff), dtype, -lim1, lim1)
    b1 = jax.random.uniform(k2, (1, d_ff), dtype, -lim1, lim1)
    w2 = jax.random.uniform(k3, (d_ff, d_model), dtype, -lim2, lim2)
    b2 = jax.random.uniform(k4, (1, d_model), dtype, -lim2, lim2)
    return w1, b1, w2, b2


def _reference(x, w1, b1, w2, b2):
    b, s, d = x.shape
    h = jnp.maximum(x.reshape(-1, d) @ w1 + b1, 0.0)
    return (h @ w2 + b2).reshape(b, s, d)


if __name__ == "__main__":
    key = jax.random.PRNGKey(0)
    kx, kp, kx2, kx3, kp3 = jax.random.split(key, 5)

    # Case 1: batch=2, seq=8, d_model=32 (f32, accumulate-into-output path).
    batch, seq, d_model = 2, 8, 32
    x = jax.random.normal(kx, (batch, seq, d_model), jnp.float32)
    w1, b1, w2, b2 = init_params(kp, d_model)
    y = feed_forward(x, w1, b1, w2, b2)
    jax.block_until_ready(y)
    assert jnp.allclose(y, _reference(x, w1, b1, w2, b2), atol=1e-5, rtol=1e-5)

    # Case 2: ragged row count (N=10) exercises the zero-padding path.
    x_r = jax.random.normal(kx2, (2, 5, d_model), jnp.float32)
    y_r = feed_forward(x_r, w1, b1, w2, b2)
    jax.block_until_ready(y_r)
    assert jnp.allclose(y_r, _reference(x_r, w1, b1, w2, b2), atol=1e-5, rtol=1e-5)

    # Case 3: multi row-tile + multi k-tile grid (tm=8, tk=128, d_model=64).
    x3 = jax.random.normal(kx3, (2, 8, 64), jnp.float32)
    w1_3, b1_3, w2_3, b2_3 = init_params(kp3, 64)
    y3 = feed_forward(x3, w1_3, b1_3, w2_3, b2_3, tm=8, tk=128)
    jax.block_until_ready(y3)
    assert jnp.allclose(y3, _reference(x3, w1_3, b1_3, w2_3, b2_3),
                        atol=1e-4, rtol=1e-4)

    # Case 4: bf16 operands exercise the f32-scratch accumulator path.
    x_bf = x.astype(jnp.bfloat16)
    w1_bf, b1_bf, w2_bf, b2_bf = (a.astype(jnp.bfloat16) for a in (w1, b1, w2, b2))
    y_bf = feed_forward(x_bf, w1_bf, b1_bf, w2_bf, b2_bf)
    jax.block_until_ready(y_bf)
    ref_bf = _reference(x_bf.astype(jnp.float32), w1_bf.astype(jnp.float32),
                        b1_bf.astype(jnp.float32), w2_bf.astype(jnp.float32),
                        b2_bf.astype(jnp.float32))
    assert jnp.allclose(y_bf.astype(jnp.float32), ref_bf, atol=1e-1, rtol=1e-1)

    print("KERNEL_OK")
</pallas_src>

<mosaic_0001>
module attributes {stable_mosaic.version = 11 : i64} {
  func.func @_ffn_kernel_f32out(%arg0: i32, %arg1: i32, %arg2: memref<8x32xf32, #tpu.memory_space<vmem>>, %arg3: memref<32x128xf32, #tpu.memory_space<vmem>>, %arg4: memref<1x128xf32, #tpu.memory_space<vmem>>, %arg5: memref<128x32xf32, #tpu.memory_space<vmem>>, %arg6: memref<1x32xf32, #tpu.memory_space<vmem>>, %arg7: memref<8x32xf32, #tpu.memory_space<vmem>>) attributes {dimension_semantics = [#tpu.dimension_semantics<parallel>, #tpu.dimension_semantics<arbitrary>], iteration_bounds = array<i64: 2, 1>, scalar_prefetch = 0 : i64, scratch_operands = 0 : i64, tpu.core_type = #tpu.core_type<tc>, window_params = [{transform_indices = @transform_0, window_bounds = array<i64: 8, 32>}, {transform_indices = @transform_1, window_bounds = array<i64: 32, 128>}, {transform_indices = @transform_2, window_bounds = array<i64: 1, 128>}, {transform_indices = @transform_3, window_bounds = array<i64: 128, 32>}, {pipeline_mode = #tpu.pipeline_mode<synchronous>, transform_indices = @transform_4, window_bounds = array<i64: 1, 32>}, {transform_indices = @transform_5, window_bounds = array<i64: 8, 32>}]} {
    %c0_i32 = arith.constant 0 : i32
    %0 = arith.cmpi eq, %arg1, %c0_i32 : i32
    %1 = arith.extui %0 : i1 to i32
    %c0_i32_0 = arith.constant 0 : i32
    %2 = arith.cmpi ne, %1, %c0_i32_0 : i32
    scf.if %2 {
      %c0_14 = arith.constant 0 : index
      %c0_15 = arith.constant 0 : index
      %16 = vector.load %arg6[%c0_14, %c0_15] : memref<1x32xf32, #tpu.memory_space<vmem>>, vector<1x32xf32>
      %17 = vector.shape_cast %16 : vector<1x32xf32> to vector<1x32xf32>
      %18 = vector.broadcast %17 : vector<1x32xf32> to vector<8x32xf32>
      %c0_16 = arith.constant 0 : index
      %c0_17 = arith.constant 0 : index
      %19 = vector.load %arg7[%c0_16, %c0_17] : memref<8x32xf32, #tpu.memory_space<vmem>>, vector<8x32xf32>
      tpu.vector_store %arg7[%c0_16, %c0_17], %18 {strides = array<i32>} : memref<8x32xf32, #tpu.memory_space<vmem>>, vector<8x32xf32>,
    } else {
    }
    %c0 = arith.constant 0 : index
    %c0_1 = arith.constant 0 : index
    %3 = vector.load %arg2[%c0, %c0_1] : memref<8x32xf32, #tpu.memory_space<vmem>>, vector<8x32xf32>
    %c0_2 = arith.constant 0 : index
    %c0_3 = arith.constant 0 : index
    %4 = vector.load %arg3[%c0_2, %c0_3] : memref<32x128xf32, #tpu.memory_space<vmem>>, vector<32x128xf32>
    %cst = arith.constant dense<0.000000e+00> : vector<8x128xf32>
    %5 = tpu.matmul %3, %4, %cst {dimension_numbers = #tpu.dot_dimension_numbers<[1], [0], [0], [1], [0, 0, 1, 1], [], []>} : vector<8x32xf32>, vector<32x128xf32>, vector<8x128xf32> -> vector<8x128xf32>
    %c0_4 = arith.constant 0 : index
    %c0_5 = arith.constant 0 : index
    %6 = vector.load %arg4[%c0_4, %c0_5] : memref<1x128xf32, #tpu.memory_space<vmem>>, vector<1x128xf32>
    %7 = vector.broadcast %6 : vector<1x128xf32> to vector<8x128xf32>
    %8 = arith.addf %5, %7 : vector<8x128xf32>
    %cst_6 = arith.constant 0.000000e+00 : f32
    %9 = vector.broadcast %cst_6 : f32 to vector<8x128xf32>
    %10 = arith.maximumf %8, %9 : vector<8x128xf32>
    %c0_7 = arith.constant 0 : index
    %c0_8 = arith.constant 0 : index
    %11 = vector.load %arg7[%c0_7, %c0_8] : memref<8x32xf32, #tpu.memory_space<vmem>>, vector<8x32xf32>
    %c0_9 = arith.constant 0 : index
    %c0_10 = arith.constant 0 : index
    %12 = vector.load %arg5[%c0_9, %c0_10] : memref<128x32xf32, #tpu.memory_space<vmem>>, vector<128x32xf32>
    %cst_11 = arith.constant dense<0.000000e+00> : vector<8x32xf32>
    %13 = tpu.matmul %10, %12, %cst_11 {dimension_numbers = #tpu.dot_dimension_numbers<[1], [0], [0], [1], [0, 0, 1, 1], [], []>} : vector<8x128xf32>, vector<128x32xf32>, vector<8x32xf32> -> vector<8x32xf32>
    %14 = arith.addf %11, %13 : vector<8x32xf32>
    %c0_12 = arith.constant 0 : index
    %c0_13 = arith.constant 0 : index
    %15 = vector.load %arg7[%c0_12, %c0_13] : memref<8x32xf32, #tpu.memory_space<vmem>>, vector<8x32xf32>
    tpu.vector_store %arg7[%c0_12, %c0_13], %14 {strides = array<i32>} : memref<8x32xf32, #tpu.memory_space<vmem>>, vector<8x32xf32>,
    return
  }
  func.func @transform_0(%arg0: i32, %arg1: i32) -> (i32, i32) {
    %c0_i32 = arith.constant 0 : i32
    %c0_i32_0 = arith.constant 0 : i32
    return %arg0, %c0_i32 : i32, i32
  }
  func.func @transform_1(%arg0: i32, %arg1: i32) -> (i32, i32) {
    %c0_i32 = arith.constant 0 : i32
    %c0_i32_0 = arith.constant 0 : i32
    return %c0_i32, %arg1 : i32, i32
  }
  func.func @transform_2(%arg0: i32, %arg1: i32) -> (i32, i32) {
    %c0_i32 = arith.constant 0 : i32
    %c0_i32_0 = arith.constant 0 : i32
    return %c0_i32, %arg1 : i32, i32
  }
  func.func @transform_3(%arg0: i32, %arg1: i32) -> (i32, i32) {
    %c0_i32 = arith.constant 0 : i32
    %c0_i32_0 = arith.constant 0 : i32
    return %arg1, %c0_i32 : i32, i32
  }
  func.func @transform_4(%arg0: i32, %arg1: i32) -> (i32, i32) {
    %c0_i32 = arith.constant 0 : i32
    %c0_i32_0 = arith.constant 0 : i32
    %c0_i32_1 = arith.constant 0 : i32
    return %c0_i32, %c0_i32_0 : i32, i32
  }
  func.func @transform_5(%arg0: i32, %arg1: i32) -> (i32, i32) {
    %c0_i32 = arith.constant 0 : i32
    %c0_i32_0 = arith.constant 0 : i32
    return %arg0, %c0_i32 : i32, i32
  }
}

</mosaic_0001>

<bundles_post_ra>
// kernel: feed_forward.1
= control target key start
LH: loop header
LB: loop body
LE: loop exit
PB: predicated region body
PF: predicated region fallthrough
CT: control target
= control target key end

     0   :  { %10 = vsyncpa [#allocation3], 0  ;;  %s1048_s0 = inlined_call_operand.vmem [shape: f32[16,32], index: 0, kind: input, shape index: {}]   ;;  %s1049_s1 = inlined_call_operand.vmem [shape: f32[32,128], index: 1, kind: input, shape index: {}]   ;;  %s1050_s2 = inlined_call_operand.vmem [shape: f32[1,128], index: 2, kind: input, shape index: {}]   ;;  %s1051_s3 = inlined_call_operand.vmem [shape: f32[128,32], index: 3, kind: input, shape index: {}]   ;;  %s1052_s4 = inlined_call_operand.vmem [shape: f32[1,32], index: 4, kind: input, shape index: {}]   ;;  %s1053_s5 = inlined_call_operand.hbm [shape: f32[16,32], index: 5, kind: output, shape index: {}]  }
   0x1   :  { %12 = vsyncpa [#allocation3 + $0x1], 0  ;;  %s850_s18 = smov 0   ;;  %s852_s19 = smov 0  }
   0x2   :  { %s854_s20 = smov 0   ;;  %s856_s21 = smov 0  }
   0x3   :  { %s858_s22 = smov 0   ;;  %s860_s23 = smov 0  }
   0x4 LB: > { %s597_s24 = sadd.s32 4294967295, %s815_s23   ;;  %s598_s25 = sadd.s32 4294967294, %s815_s23   ;;  %s815_s23 = sphi %s860_s23, %s18_s23   ;;  %s811_s22 = sphi %s858_s22, %s1060_s22   ;;  %s807_s21 = sphi %s856_s21, %s1059_s21   ;;  %s803_s20 = sphi %s854_s20, %s1058_s20   ;;  %s799_s19 = sphi %s852_s19, %s1057_s19   ;;  %s795_s18 = sphi %s850_s18, %s1056_s18  }
   0x5   : > { %s30_s26 = sadd.s32 1, %s811_s22  ;;  %s162_s27 = sadd.s32 1, %s803_s20 }
   0x6   : > { %p32_p0 = scmp.ge.s32.totalorder %s30_s26, 2  ;;  %p172_p1 = scmp.ne.s32.totalorder %s803_s20, %s799_s19 }
   0x7   : > { %p173_p2 = scmp.eq.s32.totalorder %s597_s24, 1  ;;  %p178_p3 = scmp.ne.s32.totalorder %s799_s19, %s795_s18 }
   0x8   : > { %s1062_s26 = smov (%p32_p0, %s30_s26), 0  ;;  %p179_p5 = scmp.eq.s32.totalorder %s598_s25, 1 }
   0x9   : > { %p890_p4 = por %p173_p2, %p172_p1  ;;  %s159_s29 = ssub.s32 %s811_s22, %s1062_s26 }
   0xa   : > { %p604_p6 = scmp.ge.s32.totalorder %s815_s23, 1  ;;  %p160_p7 = scmp.eq.s32.totalorder %s159_s29, 0 }
   0xb   : > { %p897_p8 = por %p179_p5, %p178_p3  ;;  %p229_p9 = scmp.lt.s32.totalorder %s815_s23, 3 }
   0xc   : > { %s903_s6 = scalar_select %p160_p7, %s803_s20, %s162_s27  }
   0xd   : > { %p230_p10 = pnand %p604_p6, %p229_p9 }
   0xe   : > { %p268_p11 = scmp.lt.s32.totalorder (!%p230_p10), %s807_s21, 1  ;;  %s265_s7 = sand.u32 (!%p230_p10), 1, %s799_s19  }
   0xf   : > { %233 = sbr.rel (%p230_p10) target bundleno = 434 (0x1b2), region = 40  ;;  %s611_s14 = sshll.u32 (!%p230_p10), %s807_s21, 7 }
  0x10   : > { %s475_s25 = scalar_lea.sflag (!%p230_p10), [#allocation3], %s265_s7  ;;  %s819_s29 = smov (!%p230_p10), [#allocation2]  }
  0x14   : > { %v302_v0 = vld [vmem:[%s1049_s1 + $0x18] sm:$0xff]  ;;  %v817_v1 = vmov 0.0   ;;  %v301_v2 = vld [vmem:[%s1049_s1 + $0x10] sm:$0xff]  ;;  %vm818_vm0 = vmmov 0   ;;  %s269_s13 = scalar_select %p268_p11, %s807_s21, 1  ;;  %v300_v5 = vld [vmem:[%s1049_s1 + $0x8] sm:$0xff] }
  0x15   : > { %636 = vmatprep.subr.mxu0 %v817_v1  ;;  %644 = vmatprep.mubr.msk.f32.mxu0 %vm818_vm0, %v817_v1  ;;  %v401_v3 = vld [vmem:[%s1051_s3 + $0x78] sm:$0xff]  ;;  %v400_v4 = vld [vmem:[%s1051_s3 + $0x70] sm:$0xff]  ;;  %v399_v6 = vld [vmem:[%s1051_s3 + $0x68] sm:$0xff]  ;;  %vm296_vm1 = vcmask 261120   ;;  %s743_s21 = sshll.u32 %s819_s29, 4  ;;  %s744_s21 = int_to_ptr.vmem [resolvable:$false] %s743_s21 }
  0x16   : > { %637 = vmatpush3.msra.mxu0 %v302_v0  ;;  %647 = vmatprep.subr.mxu1 %v817_v1  ;;  %s606_s24 = sshll.u32 %s269_s13, 3  ;;  %v299_v7 = vld [vmem:[%s1049_s1] sm:$0xff]  ;;  %v397_v10 = vld [vmem:[%s1051_s3 + $0x58] sm:$0xff]  ;;  %v396_v11 = vld [vmem:[%s1051_s3 + $0x50] sm:$0xff]  ;;  %s745_s8 = scalar_lea.vmem %s744_s21, 256 }
  0x17   : > { %638 = vmatprep.subr.mxu0 %v817_v1  ;;  %648 = vmatpush3.msra.mxu1 %v401_v3  ;;  %s271_s10 = scalar_lea.vmem %s1048_s0, %s606_s24  ;;  %v398_v9 = vld [vmem:[%s1051_s3 + $0x60] sm:$0xff]  ;;  %v395_v12 = vld [vmem:[%s1051_s3 + $0x48] sm:$0xff]  ;;  %v393_v14 = vld [vmem:[%s1051_s3 + $0x38] sm:$0xff]  ;;  %s1007_s24 = scalar_lea.hbm %s1053_s5, %s611_s14 }
  0x18   : > { %639 = vmatpush3.msra.mxu0 %v301_v2  ;;  %649 = vmatprep.subr.mxu1 %v817_v1  ;;  %v298_v8 = vld [vmem:[%s271_s10] sm:$0xff]  ;;  %v392_v15 = vld [vmem:[%s1051_s3 + $0x30] sm:$0xff]  ;;  %v391_v16 = vld [vmem:[%s1051_s3 + $0x28] sm:$0xff]  ;;  %s605_s10 = sshll.u32 %s265_s7, 3 }
  0x19   : > { %640 = vmatprep.subr.mxu0 %v817_v1  ;;  %650 = vmatpush3.msra.mxu1 %v400_v4  ;;  %v394_v13 = vld [vmem:[%s1051_s3 + $0x40] sm:$0xff]  ;;  %v389_v18 = vld [vmem:[%s1051_s3 + $0x18] sm:$0xff]  ;;  %v388_v19 = vld [vmem:[%s1051_s3 + $0x10] sm:$0xff]  ;;  %s267_s11 = scalar_lea.vmem [#allocation2], %s605_s10 }
  0x1a   : > { %641 = vmatpush3.msra.mxu0 %v300_v5  ;;  %651 = vmatprep.subr.mxu1 %v817_v1  ;;  %v390_v17 = vld [vmem:[%s1051_s3 + $0x20] sm:$0xff]  ;;  %v387_v20 = vld [vmem:[%s1051_s3 + $0x8] sm:$0xff]  ;;  %s488_s15 = sshll.u32 %s267_s11, 4  ;;  %s489_s15 = int_to_ptr.vmem [resolvable:$true] %s488_s15 }
  0x1b   : > { %642 = vmatprep.subr.mxu0 %v817_v1  ;;  %652 = vmatpush3.msra.mxu1 %v399_v6  ;;  %v386_v21 = vld [vmem:[%s1051_s3] sm:$0xff]  ;;  %s739_s27 = scalar_lea.vmem %s489_s15, 128  ;;  %p746_p1 = scmp.lt.s32.totalorder %s489_s15, %s744_s21 }
  0x1c   : > { %643 = vmatpush3.msra.mxu0 %v299_v7  ;;  %653 = vmatprep.subr.mxu1 %v817_v1  ;;  %v607_v22 = vld [vmem:[%s1052_s4] ss:$0 sm:$0xff]  ;;  %p740_p12 = scmp.ne.s32.totalorder %s489_s15, %s739_s27  ;;  %p747_p2 = scmp.lt.s32.totalorder %s745_s8, %s739_s27 }
  0x1d   : > { %645 = vmatmul.mubr.msk.f32.vlgmr.msra.gmra.mxu0 %vm296_vm1, %v298_v8  ;;  %654 = vmatpush3.msra.mxu1 %v398_v9  ;;  %297 = vst.msk [vmem:[%s267_s11] sm:$0xff] %vm296_vm1, %v607_v22  ;;  %v608_v23 = vld [vmem:[%s1050_s2] ss:$0 sm:$0xff] }
  0x1e   : > { %655 = vmatprep.subr.mxu1 %v817_v1  ;;  %679 = vmatprep.mubr.msk.f32.mxu1 %vm818_vm0, %v817_v1  ;;  %p741_p13 = pnand %p740_p12, %p890_p4  ;;  %p748_p3 = por %p747_p2, %p746_p1 }
  0x1f   : > { %656 = vmatpush3.msra.mxu1 %v397_v10 }
  0x20   : > { %657 = vmatprep.subr.mxu1 %v817_v1  ;;  %p742_p0 = pneg %p741_p13 }
  0x21   : > { %658 = vmatpush3.msra.mxu1 %v396_v11 }
  0x22   : > { %659 = vmatprep.subr.mxu1 %v817_v1  ;;  %p749_p5 = pnand %p748_p3, %p742_p0 }
  0x23   : > { %660 = vmatpush3.msra.mxu1 %v395_v12 }
  0x24   : > { %661 = vmatprep.subr.mxu1 %v817_v1  ;;  %v385_v28 = vld [vmem:[%s267_s11] sm:$0xff] }
  0x25   : > { %662 = vmatpush3.msra.mxu1 %v394_v13 }
  0x26   : > { %663 = vmatprep.subr.mxu1 %v817_v1 }
  0x27   : > { %664 = vmatpush3.msra.mxu1 %v393_v14 }
  0x28   : > { %665 = vmatprep.subr.mxu1 %v817_v1 }
  0x29   : > { %666 = vmatpush3.msra.mxu1 %v392_v15 }
  0x2a   : > { %667 = vmatprep.subr.mxu1 %v817_v1 }
  0x2b   : > { %668 = vmatpush3.msra.mxu1 %v391_v16 }
  0x2c   : > { %669 = vmatprep.subr.mxu1 %v817_v1 }
  0x2d   : > { %670 = vmatpush3.msra.mxu1 %v390_v17 }
  0x2e   : > { %671 = vmatprep.subr.mxu1 %v817_v1 }
  0x2f   : > { %672 = vmatpush3.msra.mxu1 %v389_v18 }
  0x30   : > { %673 = vmatprep.subr.mxu1 %v817_v1 }
  0x31   : > { %674 = vmatpush3.msra.mxu1 %v388_v19 }
  0x32   : > { %675 = vmatprep.subr.mxu1 %v817_v1 }
  0x33   : > { %676 = vmatpush3.msra.mxu1 %v387_v20 }
  0x34   : > { %677 = vmatprep.subr.mxu1 %v817_v1 }
  0x35   : > { %678 = vmatpush3.msra.mxu1 %v386_v21 }
  0xdd   : > { %v380_v24 = vpop.f32.mrf.mxu0 }
  0xde   : > { %v381_v25 = vadd.f32 %v608_v23, %v380_v24 }
  0xdf   : > { %v646_v26 = vpop.f32.mrf.mxu0 }
  0xe0   : > { %v384_v27 = vmax.f32 %v381_v25, 0.0 }
  0xe2   : > { %680 = vmatmul.mubr.f32.vlgmr.msra.gmra.mxu1 %v384_v27 }
 0x1a2   : > { %v468_v29 = vpop.f32.mrf.mxu1 }
 0x1a3   : > { %v472_v30 = vadd.f32 %v468_v29, %v385_v28 }
 0x1a4   : > { %v681_v31 = vpop.f32.mrf.mxu1 }
 0x1a5   : > { %473 = vst.msk [vmem:[%s267_s11] sm:$0xff] %vm296_vm1, %v472_v30 }
 0x1a6   : > { %752 = shalt.err (!%p749_p5)
}
 0x1a7   : > { %s753_s9 = scalar_lea.hbm %s1007_s24, 128  ;;  %s757_s11 = scalar_lea.hbm %s1053_s5, 256 }
 0x1a8   : > { %p754_p6 = scmp.ne.s32.totalorder %s1007_s24, %s753_s9  ;;  %p758_p10 = scmp.lt.s32.totalorder %s1007_s24, %s1053_s5 }
 0x1a9   : > { %p759_p11 = scmp.lt.s32.totalorder %s757_s11, %s753_s9 }
 0x1aa   : > { %p755_p7 = pnand %p754_p6, %p890_p4 }
 0x1ab   : > { %p760_p12 = por %p759_p11, %p758_p10 }
 0x1ac   : > { %p756_p9 = pneg %p755_p7 }
 0x1ae   : > { %p761_p13 = pnand %p760_p12, %p756_p9 }
 0x1b0   : > { %764 = shalt.err (!%p761_p13)
}
 0x1b1   : > { %682 = dma.vmem_to_hbm [thread:$0]  (%p890_p4), %s489_s15, 128, %s1007_s24, %s475_s25  }
 0x1b2 PF: > { %p688_p0 = scmp.ge.s32.totalorder %s815_s23, 2  ;;  %s500_s14 = sand.u32 1, %s795_s18  }
 0x1b3   : > { %s501_s16 = scalar_lea.sflag [#allocation3], %s500_s14 }
 0x1b4   : > { %p685_p1 = pnand %p688_p0, %p897_p8 }
 0x1b6   : > { %p686_p2 = pneg %p685_p1 }
 0x1b8   : > { %790 = dma.done.wait (%p686_p2), %s501_s16, 128  }
 0x1b9   : > { %792 = vsyncadd (%p686_p2), %s501_s16, 4294967168  ;;  %s18_s23 = sadd.s32 1, %s815_s23   ;;  %s1056_s18 = smov %s799_s19 }
 0x1ba   : > { %p15_p3 = scmp.ge.s32.totalorder %s18_s23, 4   ;;  %s1057_s19 = smov %s803_s20 }
 0x1bb   : > { %s1058_s20 = smov %s903_s6  ;;  %s1059_s21 = smov %s811_s22 }
 0x1bc   : > { %s1060_s22 = smov %s1062_s26  ;;  %17 = sbr.rel (!%p15_p3) target bundleno = 4 (0x4), region = 88 }
 0x1c1   :  { %506 = vsyncpa [#allocation3], 1 }
 0x1c2   :  { %508 = vsyncpa [#allocation3 + $0x1], 1 }

</bundles_post_ra>
